<compile_context>
chip_gen: v7x
topology: tpu7x:2x2x1
jax: 0.10.0
libtpu: 0.0.40
codegen_flags: <defaults>
</compile_context>

<pallas_src>
import jax
import jax.numpy as jnp
from jax.experimental import pallas as pl
from jax.experimental.pallas import tpu as pltpu

LN_EPS = 1e-5  # torch.nn.LayerNorm default


# ----------------------------------------------------------------------------
# In-kernel helpers
# ----------------------------------------------------------------------------
def _gather_contrib(c_ref, t_ref):
    """Select row t_ref[0] of the (num_traits, H) contrib table via one-hot reduce."""
    nt = c_ref.shape[0]
    rows = jax.lax.broadcasted_iota(jnp.int32, (nt, 1), 0)
    sel = jnp.where(rows == t_ref[0], c_ref[...], 0.0)
    return jnp.sum(sel, axis=0, keepdims=True)          # (1, H) f32


def _layernorm(y, g_ref, b_ref):
    """Two-pass (centered) LayerNorm in f32."""
    mean = jnp.mean(y, axis=-1, keepdims=True)
    yc = y - mean
    var = jnp.mean(yc * yc, axis=-1, keepdims=True)
    return yc * jax.lax.rsqrt(var + LN_EPS) * g_ref[...] + b_ref[...]


# ----------------------------------------------------------------------------
# Kernels
# ----------------------------------------------------------------------------
def will_kernel_fused(t_ref, h_ref, w_ref, c_ref, g_ref, b_ref, o_ref):
    # t_ref: (1,) int32 trait index (SMEM, scalar prefetch)
    # h_ref: (TM, H) hidden rows; w_ref: (H, H) W1^T; c_ref: (NT, H) contrib+bias
    # g_ref/b_ref: (1, H) LayerNorm gamma/beta; o_ref: (TM, H)
    h = h_ref[...]
    decision = jnp.dot(h.astype(w_ref.dtype), w_ref[...],
                       preferred_element_type=jnp.float32)
    y = h.astype(jnp.float32) + decision + _gather_contrib(c_ref, t_ref)
    o_ref[...] = _layernorm(y, g_ref, b_ref).astype(o_ref.dtype)


def will_kernel_ktiled(t_ref, h_ref, w_ref, c_ref, g_ref, b_ref, o_ref, acc_ref):
    # Same as above but the contraction dim is tiled: w_ref is a (TK, H) slice of
    # W1^T, acc_ref is a (TM, H) f32 accumulator, epilogue runs at the last k.
    k = pl.program_id(1)
    nk = pl.num_programs(1)
    tk = w_ref.shape[0]

    @pl.when(k == 0)
    def _():
        acc_ref[...] = jnp.zeros_like(acc_ref)

    start = pl.multiple_of(k * tk, tk)                   # lane-aligned (tk % 128 == 0)
    h_k = h_ref[:, pl.ds(start, tk)]
    acc_ref[...] += jnp.dot(h_k.astype(w_ref.dtype), w_ref[...],
                            preferred_element_type=jnp.float32)

    @pl.when(k == nk - 1)
    def _():
        y = h_ref[...].astype(jnp.float32) + acc_ref[...] + _gather_contrib(c_ref, t_ref)
        o_ref[...] = _layernorm(y, g_ref, b_ref).astype(o_ref.dtype)


# ----------------------------------------------------------------------------
# Parameter preparation (one-time, cache outside the forward path)
# ----------------------------------------------------------------------------
def prepare_will_params(params, matmul_dtype=jnp.bfloat16):
    # TODO(synk): on v7x, matmul_dtype could be an fp8 type for very large H to
    # halve weight VMEM again (validate accuracy first).
    H = params["gamma"].shape[0]
    w = params["w"]                          # (H, 2H): [hidden half | personality half]
    w1 = w[:, :H]                            # multiplies hidden_states
    w2 = w[:, H:]                            # multiplies personality
    contrib = params["embedding"] @ w2.T + params["b"]   # (num_traits, H), per-trait constant
    return {
        "w1_t": jnp.asarray(w1.T, matmul_dtype),         # (H_in, H_out), cast once
        "contrib": jnp.asarray(contrib, jnp.float32),
        "gamma": params["gamma"].reshape(1, H).astype(jnp.float32),
        "beta": params["beta"].reshape(1, H).astype(jnp.float32),
    }


# ----------------------------------------------------------------------------
# Tiling / VMEM planning
# ----------------------------------------------------------------------------
def _vmem_capacity_bytes():
    try:
        cap = int(pltpu.get_tpu_info().vmem_capacity_bytes)
        if cap > 0:
            return cap
    except Exception:
        pass
    return 64 * 1024 * 1024      # conservative fallback (v7x per-TensorCore)


def _plan(M, H, in_it, out_it, w_it, tm_target, k_tile):
    cap = _vmem_capacity_bytes()
    budget = int(cap * 0.85)                 # ~15% headroom below physical VMEM
    w_bytes = H * H * w_it

    # K-tiling decision: only when the full weight would crowd VMEM (large H).
    if k_tile is not None and 128 <= k_tile < H and H % k_tile == 0 and k_tile % 128 == 0:
        use_kt, tk = True, int(k_tile)
    elif w_bytes > budget // 4 and H % 128 == 0:
        use_kt, tk = True, 128
        while (tk * 2 < H and H % (tk * 2) == 0
               and 2 * (tk * 2) * H * w_it <= budget // 8):
            tk *= 2
    else:
        # TODO(synk): huge H that is not a multiple of 128 would need lane-dim
        # padding before K-tiling can apply; fall back to the fused path here.
        use_kt, tk = False, H

    # Row tile: multiple of 8, <= M (rounded down), <= target, fits the budget.
    # TODO(synk): detect TensorCore count (v7x has 2) and bias grid_m >= 2/core.
    tm = max(8, min(tm_target, (M // 8) * 8)) if M >= 8 else M

    def est(tm_):
        io = 2 * tm_ * H * in_it + 2 * tm_ * H * out_it          # pipelined in/out
        wgt = (2 * tk * H * w_it) if use_kt else (1 * w_bytes)    # Buffered(1) when fused
        scratch = tm_ * H * 4 if use_kt else 0                    # f32 accumulator
        temps = 4 * tm_ * H * 4                                    # in-kernel temporaries
        small = 8 * H * 4                                          # contrib/gamma/beta
        return io + wgt + scratch + temps + small

    while tm > 8 and est(tm) > budget:
        tm = max(8, ((tm // 2) // 8) * 8)

    vmem_limit = int(min(budget, max(32 * 1024 * 1024, 2 * est(tm))))
    return tm, tk, use_kt, vmem_limit


# ----------------------------------------------------------------------------
# Forward wrapper
# ----------------------------------------------------------------------------
def will_module_pallas(hidden_states, trait_idx, prepared, *, tm_target=1024, k_tile=None):
    """hidden_states: (B, S, H) f32 or bf16; trait_idx: scalar int;
    prepared: prepare_will_params(...). Output dtype follows the input dtype."""
    B, S, H = hidden_states.shape
    M = B * S
    x2d = hidden_states.reshape(M, H)

    w1_t = prepared["w1_t"]
    contrib = prepared["contrib"]
    gamma, beta = prepared["gamma"], prepared["beta"]
    NT = contrib.shape[0]

    in_it = jnp.dtype(hidden_states.dtype).itemsize
    out_it = in_it
    w_it = jnp.dtype(w1_t.dtype).itemsize

    tm, tk, use_kt, vmem_limit = _plan(M, H, in_it, out_it, w_it, tm_target, k_tile)
    grid_m = pl.cdiv(M, tm)                  # partial last block; no jnp.pad copy
    trait = jnp.asarray([trait_idx], dtype=jnp.int32)

    cost = pl.CostEstimate(
        flops=2 * M * H * H,
        transcendentals=M,                                   # one rsqrt per row
        bytes_accessed=M * H * (in_it + out_it) + H * H * w_it + (NT + 3) * H * 4,
    )

    if not use_kt:
        kernel = will_kernel_fused
        grid_spec = pltpu.PrefetchScalarGridSpec(
            num_scalar_prefetch=1,
            grid=(grid_m,),
            in_specs=[
                pl.BlockSpec((tm, H), lambda i, t: (i, 0)),                    # hidden tile
                pl.BlockSpec((H, H), lambda i, t: (0, 0),
                             pipeline_mode=pl.Buffered(1)),                    # W1^T, single-buffered
                pl.BlockSpec((NT, H), lambda i, t: (0, 0)),                    # contrib table
                pl.BlockSpec((1, H), lambda i, t: (0, 0)),                     # gamma
                pl.BlockSpec((1, H), lambda i, t: (0, 0)),                     # beta
            ],
            out_specs=pl.BlockSpec((tm, H), lambda i, t: (i, 0)),
            scratch_shapes=[],
        )
        dims = ("parallel",)
    else:
        kernel = will_kernel_ktiled
        grid_k = H // tk
        grid_spec = pltpu.PrefetchScalarGridSpec(
            num_scalar_prefetch=1,
            grid=(grid_m, grid_k),
            in_specs=[
                pl.BlockSpec((tm, H), lambda i, k, t: (i, 0)),                 # full hidden tile
                pl.BlockSpec((tk, H), lambda i, k, t: (k, 0)),                 # W1^T K-slice
                pl.BlockSpec((NT, H), lambda i, k, t: (0, 0)),
                pl.BlockSpec((1, H), lambda i, k, t: (0, 0)),
                pl.BlockSpec((1, H), lambda i, k, t: (0, 0)),
            ],
            out_specs=pl.BlockSpec((tm, H), lambda i, k, t: (i, 0)),
            scratch_shapes=[pltpu.VMEM((tm, H), jnp.float32)],
        )
        dims = ("parallel", "arbitrary")

    out = pl.pallas_call(
        kernel,
        out_shape=jax.ShapeDtypeStruct((M, H), hidden_states.dtype),
        grid_spec=grid_spec,
        compiler_params=pltpu.CompilerParams(
            dimension_semantics=dims,
            vmem_limit_bytes=vmem_limit,
        ),
        cost_estimate=cost,
    )(trait, x2d, w1_t, contrib, gamma, beta)

    return out.reshape(B, S, H)


# ----------------------------------------------------------------------------
# Pure-JAX reference + init
# ----------------------------------------------------------------------------
def will_module_ref(hidden_states, trait_idx, params):
    B, S, H = hidden_states.shape
    pers = jnp.broadcast_to(params["embedding"][trait_idx], (B, S, H))
    combined = jnp.concatenate([hidden_states, pers], axis=-1)
    decision = combined @ params["w"].T + params["b"]
    y = hidden_states + decision
    mean = jnp.mean(y, axis=-1, keepdims=True)
    var = jnp.mean((y - mean) ** 2, axis=-1, keepdims=True)
    return (y - mean) * jax.lax.rsqrt(var + LN_EPS) * params["gamma"] + params["beta"]


def init_params(hidden_dim, num_traits, key):
    k_emb, k_w, k_b = jax.random.split(key, 3)
    fan_in = 2 * hidden_dim
    bound = 1.0 / jnp.sqrt(fan_in)
    return {
        "embedding": jax.random.normal(k_emb, (num_traits, hidden_dim), jnp.float32),
        "w": jax.random.uniform(k_w, (hidden_dim, fan_in), jnp.float32, -bound, bound),
        "b": jax.random.uniform(k_b, (hidden_dim,), jnp.float32, -bound, bound),
        "gamma": jnp.ones((hidden_dim,), jnp.float32),
        "beta": jnp.zeros((hidden_dim,), jnp.float32),
    }


if __name__ == "__main__":
    B, S, H, NUM_TRAITS = 2, 8, 32, 4
    key = jax.random.PRNGKey(0)
    k_params, k_x, k_p2, k_x2 = jax.random.split(key, 4)

    params = init_params(H, NUM_TRAITS, k_params)
    hidden_states = jax.random.normal(k_x, (B, S, H), jnp.float32)
    trait_idx = 1
    ref = will_module_ref(hidden_states, trait_idx, params)

    # f32 MXU path: exact-ish against the reference.
    prepared_f32 = prepare_will_params(params, matmul_dtype=jnp.float32)
    out_f32 = jax.block_until_ready(will_module_pallas(hidden_states, trait_idx, prepared_f32))
    assert out_f32.shape == (B, S, H)
    assert jnp.allclose(out_f32, ref, atol=1e-4, rtol=1e-4)

    # bf16 weights (default perf configuration): looser tolerance.
    prepared_bf16 = prepare_will_params(params)
    out_bw = jax.block_until_ready(will_module_pallas(hidden_states, trait_idx, prepared_bf16))
    assert out_bw.shape == (B, S, H)
    assert jnp.allclose(out_bw, ref, atol=3e-2, rtol=3e-2)

    # bf16 activations end-to-end (halves HBM traffic on mem-bound v5e/v6e).
    hs_bf16 = hidden_states.astype(jnp.bfloat16)
    out_bio = jax.block_until_ready(will_module_pallas(hs_bf16, trait_idx, prepared_bf16))
    assert out_bio.dtype == jnp.bfloat16
    assert jnp.allclose(out_bio.astype(jnp.float32), ref, atol=1e-1, rtol=1e-1)

    # Ragged M (no jnp.pad): partial last block, OOB output rows dropped.
    hs2 = jax.random.normal(jax.random.PRNGKey(1), (3, 5, H), jnp.float32)
    out2 = jax.block_until_ready(will_module_pallas(hs2, 2, prepared_f32))
    ref2 = will_module_ref(hs2, 2, params)
    assert jnp.allclose(out2, ref2, atol=1e-4, rtol=1e-4)

    # K-tiled path (auto-selected for large H / v7x); force it at H=256, tk=128.
    H2 = 256
    params2 = init_params(H2, NUM_TRAITS, k_p2)
    hs3 = jax.random.normal(k_x2, (B, S, H2), jnp.float32)
    prepared2_f32 = prepare_will_params(params2, matmul_dtype=jnp.float32)
    out_fused = jax.block_until_ready(will_module_pallas(hs3, 3, prepared2_f32))
    out_kt = jax.block_until_ready(will_module_pallas(hs3, 3, prepared2_f32, k_tile=128))
    ref3 = will_module_ref(hs3, 3, params2)
    assert jnp.allclose(out_kt, out_fused, atol=1e-4, rtol=1e-4)
    assert jnp.allclose(out_kt, ref3, atol=5e-3, rtol=5e-3)

    print("KERNEL_OK")
</pallas_src>

<mosaic_0001>
module attributes {stable_mosaic.version = 11 : i64} {
  func.func @will_kernel_fused(%arg0: i32, %arg1: memref<1xi32, #tpu.memory_space<smem>>, %arg2: memref<16x32xf32, #tpu.memory_space<vmem>>, %arg3: memref<32x32xf32, #tpu.memory_space<vmem>>, %arg4: memref<4x32xf32, #tpu.memory_space<vmem>>, %arg5: memref<1x32xf32, #tpu.memory_space<vmem>>, %arg6: memref<1x32xf32, #tpu.memory_space<vmem>>, %arg7: memref<16x32xf32, #tpu.memory_space<vmem>>) attributes {dimension_semantics = [#tpu.dimension_semantics<parallel>], iteration_bounds = array<i64: 1>, scalar_prefetch = 1 : i64, scratch_operands = 0 : i64, tpu.core_type = #tpu.core_type<tc>, window_params = [{transform_indices = @transform_0, window_bounds = array<i64: 16, 32>}, {pipeline_mode = #tpu.pipeline_mode<synchronous>, transform_indices = @transform_1, window_bounds = array<i64: 32, 32>}, {pipeline_mode = #tpu.pipeline_mode<synchronous>, transform_indices = @transform_2, window_bounds = array<i64: 4, 32>}, {pipeline_mode = #tpu.pipeline_mode<synchronous>, transform_indices = @transform_3, window_bounds = array<i64: 1, 32>}, {pipeline_mode = #tpu.pipeline_mode<synchronous>, transform_indices = @transform_4, window_bounds = array<i64: 1, 32>}, {transform_indices = @transform_5, window_bounds = array<i64: 16, 32>}]} {
    %c0 = arith.constant 0 : index
    %c0_0 = arith.constant 0 : index
    %0 = vector.load %arg2[%c0, %c0_0] : memref<16x32xf32, #tpu.memory_space<vmem>>, vector<16x32xf32>
    %c0_1 = arith.constant 0 : index
    %c0_2 = arith.constant 0 : index
    %1 = vector.load %arg3[%c0_1, %c0_2] : memref<32x32xf32, #tpu.memory_space<vmem>>, vector<32x32xf32>
    %cst = arith.constant dense<0.000000e+00> : vector<16x32xf32>
    %2 = tpu.matmul %0, %1, %cst {dimension_numbers = #tpu.dot_dimension_numbers<[1], [0], [0], [1], [0, 0, 1, 1], [], []>} : vector<16x32xf32>, vector<32x32xf32>, vector<16x32xf32> -> vector<16x32xf32>
    %3 = arith.addf %0, %2 : vector<16x32xf32>
    %4 = tpu.iota {dimensions = array<i32: 0>} : vector<4x1xi32>
    %c0_3 = arith.constant 0 : index
    %5 = memref.load %arg1[%c0_3] : memref<1xi32, #tpu.memory_space<smem>>
    %6 = vector.broadcast %5 : i32 to vector<4x1xi32>
    %7 = arith.cmpi eq, %4, %6 : vector<4x1xi32>
    %c0_4 = arith.constant 0 : index
    %c0_5 = arith.constant 0 : index
    %8 = vector.load %arg4[%c0_4, %c0_5] : memref<4x32xf32, #tpu.memory_space<vmem>>, vector<4x32xf32>
    %cst_6 = arith.constant 0.000000e+00 : f32
    %9 = vector.shape_cast %7 : vector<4x1xi1> to vector<4x1xi1>
    %10 = vector.broadcast %9 : vector<4x1xi1> to vector<4x32xi1>
    %11 = vector.broadcast %cst_6 : f32 to vector<4x32xf32>
    %12 = arith.select %10, %8, %11 : vector<4x32xi1>, vector<4x32xf32>
    %cst_7 = arith.constant dense<0.000000e+00> : vector<32xf32>
    %13 = vector.multi_reduction <add>, %12, %cst_7 [0] : vector<4x32xf32> to vector<32xf32>
    %14 = vector.shape_cast %13 : vector<32xf32> to vector<1x32xf32>
    %15 = vector.broadcast %14 : vector<1x32xf32> to vector<16x32xf32>
    %16 = arith.addf %3, %15 : vector<16x32xf32>
    %cst_8 = arith.constant dense<0.000000e+00> : vector<16xf32>
    %17 = vector.multi_reduction <add>, %16, %cst_8 [1] : vector<16x32xf32> to vector<16xf32>
    %18 = vector.shape_cast %17 : vector<16xf32> to vector<16x1xf32>
    %cst_9 = arith.constant 3.200000e+01 : f32
    %19 = vector.broadcast %cst_9 : f32 to vector<16x1xf32>
    %20 = arith.divf %18, %19 : vector<16x1xf32>
    %21 = vector.broadcast %20 : vector<16x1xf32> to vector<16x32xf32>
    %22 = arith.subf %16, %21 : vector<16x32xf32>
    %23 = arith.mulf %22, %22 : vector<16x32xf32>
    %cst_10 = arith.constant dense<0.000000e+00> : vector<16xf32>
    %24 = vector.multi_reduction <add>, %23, %cst_10 [1] : vector<16x32xf32> to vector<16xf32>
    %25 = vector.shape_cast %24 : vector<16xf32> to vector<16x1xf32>
    %cst_11 = arith.constant 3.200000e+01 : f32
    %26 = vector.broadcast %cst_11 : f32 to vector<16x1xf32>
    %27 = arith.divf %25, %26 : vector<16x1xf32>
    %cst_12 = arith.constant 9.99999974E-6 : f32
    %28 = vector.broadcast %cst_12 : f32 to vector<16x1xf32>
    %29 = arith.addf %27, %28 : vector<16x1xf32>
    %30 = math.rsqrt %29 : vector<16x1xf32>
    %31 = vector.broadcast %30 : vector<16x1xf32> to vector<16x32xf32>
    %32 = arith.mulf %22, %31 : vector<16x32xf32>
    %c0_13 = arith.constant 0 : index
    %c0_14 = arith.constant 0 : index
    %33 = vector.load %arg5[%c0_13, %c0_14] : memref<1x32xf32, #tpu.memory_space<vmem>>, vector<1x32xf32>
    %34 = vector.broadcast %33 : vector<1x32xf32> to vector<16x32xf32>
    %35 = arith.mulf %32, %34 : vector<16x32xf32>
    %c0_15 = arith.constant 0 : index
    %c0_16 = arith.constant 0 : index
    %36 = vector.load %arg6[%c0_15, %c0_16] : memref<1x32xf32, #tpu.memory_space<vmem>>, vector<1x32xf32>
    %37 = vector.broadcast %36 : vector<1x32xf32> to vector<16x32xf32>
    %38 = arith.addf %35, %37 : vector<16x32xf32>
    %c0_17 = arith.constant 0 : index
    %c0_18 = arith.constant 0 : index
    %39 = vector.load %arg7[%c0_17, %c0_18] : memref<16x32xf32, #tpu.memory_space<vmem>>, vector<16x32xf32>
    tpu.vector_store %arg7[%c0_17, %c0_18], %38 {strides = array<i32>} : memref<16x32xf32, #tpu.memory_space<vmem>>, vector<16x32xf32>,
    return
  }
  func.func @transform_0(%arg0: i32, %arg1: memref<1xi32, #tpu.memory_space<smem>>) -> (i32, i32) {
    %c0_i32 = arith.constant 0 : i32
    %c0_i32_0 = arith.constant 0 : i32
    return %arg0, %c0_i32 : i32, i32
  }
  func.func @transform_1(%arg0: i32, %arg1: memref<1xi32, #tpu.memory_space<smem>>) -> (i32, i32) {
    %c0_i32 = arith.constant 0 : i32
    %c0_i32_0 = arith.constant 0 : i32
    %c0_i32_1 = arith.constant 0 : i32
    return %c0_i32, %c0_i32_0 : i32, i32
  }
  func.func @transform_2(%arg0: i32, %arg1: memref<1xi32, #tpu.memory_space<smem>>) -> (i32, i32) {
    %c0_i32 = arith.constant 0 : i32
    %c0_i32_0 = arith.constant 0 : i32
    %c0_i32_1 = arith.constant 0 : i32
    return %c0_i32, %c0_i32_0 : i32, i32
  }
  func.func @transform_3(%arg0: i32, %arg1: memref<1xi32, #tpu.memory_space<smem>>) -> (i32, i32) {
    %c0_i32 = arith.constant 0 : i32
    %c0_i32_0 = arith.constant 0 : i32
    %c0_i32_1 = arith.constant 0 : i32
    return %c0_i32, %c0_i32_0 : i32, i32
  }
  func.func @transform_4(%arg0: i32, %arg1: memref<1xi32, #tpu.memory_space<smem>>) -> (i32, i32) {
    %c0_i32 = arith.constant 0 : i32
    %c0_i32_0 = arith.constant 0 : i32
    %c0_i32_1 = arith.constant 0 : i32
    return %c0_i32, %c0_i32_0 : i32, i32
  }
  func.func @transform_5(%arg0: i32, %arg1: memref<1xi32, #tpu.memory_space<smem>>) -> (i32, i32) {
    %c0_i32 = arith.constant 0 : i32
    %c0_i32_0 = arith.constant 0 : i32
    return %arg0, %c0_i32 : i32, i32
  }
}

</mosaic_0001>

<bundles_post_ra>
// kernel: tpu_custom_call.1
= control target key start
LH: loop header
LB: loop body
LE: loop exit
PB: predicated region body
PF: predicated region fallthrough
CT: control target
= control target key end

     0   :  { %12 = vsyncpa [#allocation5], 0  ;;  %s440_s0 = inlined_call_operand.<no memory space> [shape: s32[1], index: 0, kind: input, shape index: {}]   ;;  %s441_s1 = inlined_call_operand.hbm [shape: f32[16,32], index: 1, kind: input, shape index: {}]   ;;  %s442_s2 = inlined_call_operand.hbm [shape: f32[32,32], index: 2, kind: input, shape index: {}]   ;;  %s443_s3 = inlined_call_operand.vmem [shape: f32[4,32], index: 3, kind: input, shape index: {}]   ;;  %s444_s4 = inlined_call_operand.vmem [shape: f32[1,32], index: 4, kind: input, shape index: {}]   ;;  %s445_s5 = inlined_call_operand.vmem [shape: f32[1,32], index: 5, kind: input, shape index: {}]   ;;  %s446_s6 = inlined_call_operand.hbm [shape: f32[16,32], index: 6, kind: output, shape index: {}]  }
   0x1   :  { %13 = vsyncpa [#allocation8], 0 }
   0x2   :  { %14 = vsyncpa [#allocation6], 0  ;;  %s335_s21 = smov [#allocation4]   ;;  %s263_s25 = scalar_lea.hbm %s441_s1, 256 }
   0x3   :  { %s20_s22 = sshll.u32 %s335_s21, 4  ;;  %p264_p0 = scmp.ne.s32.totalorder %s441_s1, %s263_s25  ;;  %s21_s22 = int_to_ptr.vmem [resolvable:$true] %s20_s22 }
   0x4   :  { %p267_p1 = scmp.lt.u32.totalorder %s263_s25, %s441_s1 }
   0x6   :  { %p269_p2 = pnand %p267_p1, %p264_p0 }
   0x8   :  { %272 = shalt.err (!%p269_p2)
}
   0x9   :  { %s273_s30 = scalar_lea.vmem %s21_s22, 256  ;;  %p278_p4 = scmp.lt.s32.totalorder %s21_s22, %s21_s22 }
   0xa   :  { %p274_p3 = scmp.ne.s32.totalorder %s21_s22, %s273_s30  ;;  %p279_p5 = scmp.lt.s32.totalorder %s273_s30, %s273_s30 }
   0xc   :  { %p280_p6 = por %p279_p5, %p278_p4 }
   0xe   :  { %p281_p7 = pnand %p280_p6, %p274_p3 }
  0x10   :  { %284 = shalt.err (!%p281_p7)
}
  0x11   :  { %s336_s7 = smov 128   ;;  %s337_s8 = smov 8  }
  0x12   :  { %26 = dma.hbm_to_vmem [thread:$0]  %s441_s1, 256, %s21_s22, [#allocation5], %s336_s7, %s336_s7, %s337_s8  }
  0x13   :  { %s338_s11 = smov [#allocation7]   ;;  %s285_s15 = scalar_lea.hbm %s442_s2, 512 }
  0x14   :  { %s32_s12 = sshll.u32 %s338_s11, 4  ;;  %p286_p8 = scmp.ne.s32.totalorder %s442_s2, %s285_s15  ;;  %s33_s12 = int_to_ptr.vmem [resolvable:$true] %s32_s12 }
  0x15   :  { %p289_p9 = scmp.lt.u32.totalorder %s285_s15, %s442_s2 }
  0x17   :  { %p291_p10 = pnand %p289_p9, %p286_p8 }
  0x19   :  { %294 = shalt.err (!%p291_p10)
}
  0x1a   :  { %s295_s20 = scalar_lea.vmem %s33_s12, 512  ;;  %p300_p12 = scmp.lt.s32.totalorder %s33_s12, %s33_s12 }
  0x1b   :  { %p296_p11 = scmp.ne.s32.totalorder %s33_s12, %s295_s20  ;;  %p301_p13 = scmp.lt.s32.totalorder %s295_s20, %s295_s20 }
  0x1d   :  { %p302_p0 = por %p301_p13, %p300_p12 }
  0x1f   :  { %p303_p1 = pnand %p302_p0, %p296_p11 }
  0x21   :  { %306 = shalt.err (!%p303_p1)
}
  0x22   :  { %38 = dma.hbm_to_vmem [thread:$0]  %s442_s2, 512, %s33_s12, [#allocation8], %s336_s7, %s336_s7, %s337_s8  }
  0x23   :  { %329 = dma.done.wait [#allocation5], 256  }
  0x24   :  { %330 = vsyncadd [#allocation5], 4294967040 }
  0x25   :  { %331 = dma.done.wait [#allocation8], 512  }
  0x26   :  { %332 = vsyncadd [#allocation8], 4294966784  ;;  %vm57_vm0 = vcmask 261120   ;;  %v53_v0 = vld [vmem:[#allocation7] sm:$0xff]  ;;  %v54_v1 = vld [vmem:[#allocation7 + $0x8] sm:$0xff]  ;;  %v141_v8 = vlaneseq  ;;  %v144_v10 = vstv %s440_s0  ;;  %vm150_vm2 = vcmask 257024  }
  0x27   :  { %v55_v2 = vld [vmem:[#allocation7 + $0x10] sm:$0xff]  ;;  %v246_v3 = vpack.c.bf16 %v54_v1, %v53_v0  ;;  %v56_v4 = vld [vmem:[#allocation7 + $0x18] sm:$0xff]  ;;  %s339_s27 = smov [#allocation9]  }
  0x28   :  { %v51_v5 = vld [vmem:[#allocation4] sm:$0xff]  ;;  %v250_v6 = vpack.c.bf16 %v56_v4, %v55_v2  ;;  %v52_v7 = vld [vmem:[#allocation4 + $0x8] sm:$0xff]  ;;  %v142_v9 = vshrl.u32 %v141_v8, 7  ;;  %s212_s28 = sshll.u32 %s339_s27, 4  ;;  %s213_s28 = int_to_ptr.vmem [resolvable:$true] %s212_s28 }
  0x29   :  { %243 = vmatprep.mubr.msk.f32.mxu0 %vm57_vm0, %v51_v5  ;;  %247 = vmatprep.subr.bf16.mxu0 %v246_v3  ;;  %v146_v11 = vld [vmem:[%s443_s3] sm:$0xf]  ;;  %s307_s29 = scalar_lea.vmem %s213_s28, 256  ;;  %p312_p3 = scmp.lt.s32.totalorder %s213_s28, %s213_s28 }
  0x2a   :  { %249 = vmatpush3.bf16.msra.mxu0 %v246_v3  ;;  %vm145_vm1 = vcmp.eq.s32.totalorder %v142_v9, %v144_v10  ;;  %v227_v45 = vld [vmem:[%s444_s4] ss:$0 sm:$0xff]  ;;  %p308_p2 = scmp.ne.s32.totalorder %s213_s28, %s307_s29  ;;  %p313_p4 = scmp.lt.s32.totalorder %s307_s29, %s307_s29 }
  0x2b   :  { %251 = vmatprep.subr.bf16.mxu0 %v250_v6  ;;  %v149_v12 = vsel %vm145_vm1, %v146_v11, 0.0  ;;  %v228_v47 = vld [vmem:[%s445_s5] ss:$0 sm:$0xff] }
  0x2c   :  { %v151_v13 = vsel %vm150_vm2, %v149_v12, 0.0  ;;  %p314_p5 = por %p313_p4, %p312_p3 }
  0x2d   :  { %v152_v14 = vrot.slane %v151_v13, 4 }
  0x2e   :  { %253 = vmatpush3.bf16.msra.mxu0 %v250_v6  ;;  %p315_p6 = pnand %p314_p5, %p308_p2 }
  0x2f   :  { %v153_v15 = vadd.f32 %v152_v14, %v151_v13 }
  0x31   :  { %244 = vmatmul.mubr.msk.f32.vlgmr.msra.gmra.mrb[0].mxu0 %vm57_vm0, %v52_v7  ;;  %v154_v16 = vrot.slane %v153_v15, 2 }
  0x33   :  { %v155_v17 = vadd.f32 %v154_v16, %v153_v15 }
  0x35   :  { %v156_v18 = vrot.slane %v155_v17, 1 }
  0x37   :  { %v157_v20 = vadd.f32 %v156_v18, %v155_v17 }
 0x104   :  { %v245_v19 = vpop.f32.mrb[0].mxu0 }
 0x105   :  { %v130_v21 = vpop.f32.mrb[1].mxu0  ;;  %v140_v22 = vadd.f32 %v245_v19, %v52_v7 }
 0x106   :  { %v139_v23 = vadd.f32 %v130_v21, %v51_v5 }
 0x107   :  { %v159_v26 = vadd.f32 %v157_v20, %v140_v22 }
 0x108   :  { %v158_v24 = vadd.f32 %v157_v20, %v139_v23 }
 0x109   :  { %v163_v27 = vsel %vm57_vm0, %v159_v26, 0.0 }
 0x10a   :  { %v160_v25 = vsel %vm57_vm0, %v158_v24, 0.0 }
 0x10b   :  { %161 = vadd.xlane.f32.xlu0 %v160_v25 }
 0x10f   :  { %164 = vadd.xlane.f32.xlu0 %v163_v27 }
 0x198   :  { %v162_v28 = vpop.xlane.xlu0 %161 }
 0x199   :  { %v167_v29 = vmul.f32 0.03125, %v162_v28 }
 0x19b   :  { %v169_v30 = vsub.f32 %v158_v24, %v167_v29 }
 0x19c   :  { %v165_v31 = vpop.xlane.xlu0 %164 }
 0x19d   :  { %v168_v32 = vmul.f32 0.03125, %v165_v31  ;;  %v171_v33 = vmul.f32 %v169_v30, %v169_v30 }
 0x19f   :  { %v170_v34 = vsub.f32 %v159_v26, %v168_v32  ;;  %v173_v35 = vsel %vm57_vm0, %v171_v33, 0.0 }
 0x1a0   :  { %174 = vadd.xlane.f32.xlu1 %v173_v35 }
 0x1a1   :  { %v172_v36 = vmul.f32 %v170_v34, %v170_v34 }
 0x1a3   :  { %v176_v37 = vsel %vm57_vm0, %v172_v36, 0.0 }
 0x1a4   :  { %177 = vadd.xlane.f32.xlu1 %v176_v37 }
 0x22d   :  { %v175_v38 = vpop.xlane.xlu1 %174 }
 0x22e   :  { %v179_v39 = vmul.f32 0.03125, %v175_v38 }
 0x230   :  { %v181_v40 = vadd.f32 1e-05, %v179_v39 }
 0x231   :  { %v178_v41 = vpop.xlane.xlu1 %177 }
 0x232   :  { %259 = vrsqrt.f32 %v181_v40  ;;  %v180_v42 = vmul.f32 0.03125, %v178_v41 }
 0x234   :  { %v182_v43 = vadd.f32 1e-05, %v180_v42 }
 0x236   :  { %261 = vrsqrt.f32 %v182_v43 }
 0x23c   :  { %v260_v44 = vpop.eup %259 }
 0x23d   :  { %v185_v46 = vmul.f32 %v260_v44, %v169_v30 }
 0x23f   :  { %v194_v48 = vmul.f32 %v227_v45, %v185_v46 }
 0x240   :  { %v262_v49 = vpop.eup %261 }
 0x241   :  { %v186_v50 = vmul.f32 %v262_v49, %v170_v34  ;;  %v203_v51 = vadd.f32 %v228_v47, %v194_v48 }
 0x243   :  { %v195_v52 = vmul.f32 %v227_v45, %v186_v50  ;;  %205 = vst.msk [vmem:[#allocation9] sm:$0xff] %vm57_vm0, %v203_v51 }
 0x245   :  { %v204_v53 = vadd.f32 %v228_v47, %v195_v52 }
 0x247   :  { %206 = vst.msk [vmem:[#allocation9 + $0x8] sm:$0xff] %vm57_vm0, %v204_v53 }
 0x248   :  { %318 = shalt.err (!%p315_p6)
}
 0x249   :  { %s319_s30 = scalar_lea.hbm %s446_s6, 256 }
 0x24a   :  { %p320_p7 = scmp.ne.s32.totalorder %s446_s6, %s319_s30  ;;  %p323_p8 = scmp.lt.u32.totalorder %s319_s30, %s446_s6 }
 0x24c   :  { %p325_p9 = pnand %p323_p8, %p320_p7 }
 0x24e   :  { %328 = shalt.err (!%p325_p9)
}
 0x24f   :  { %218 = dma.vmem_to_hbm [thread:$0]  %s213_s28, 256, %s446_s6, [#allocation6], %s336_s7, %s336_s7, %s337_s8  }
 0x250   :  { %333 = dma.done.wait [#allocation6], 256  }
 0x251   :  { %334 = vsyncadd [#allocation6], 4294967040 }
 0x252   :  { %222 = vsyncpa [#allocation5], 1 }
 0x253   :  { %223 = vsyncpa [#allocation8], 1 }
 0x254   :  { %224 = vsyncpa [#allocation6], 1 }

</bundles_post_ra>
